<compile_context>
chip_gen: v6e
topology: v6e:2x2x1
jax: 0.10.0
libtpu: 0.0.40
codegen_flags: <defaults>
</compile_context>

<pallas_src>
import numpy as np
import jax
import jax.numpy as jnp
from jax.experimental import pallas as pl
from jax.experimental.pallas import tpu as pltpu


def _fusion_kernel(x_ref, wg_ref, bg_ref, seg_ref, ws_ref, bs_ref, out_ref):
    """One batch tile of gated weighted fusion.

    Refs:
      x_ref   : [TB, sum_in]       streamed activation tile (x_cat)
      wg_ref  : [sum_in, Gp]       gate weight (padded lanes = 0)
      bg_ref  : [1, Gp]            gate bias   (padded lanes = -1e30)
      seg_ref : [Gp, sum_in]       one-hot input->feature-segment indicator
      ws_ref  : [sum_in, out_pad]  vstack of projection weights (col-padded)
      bs_ref  : [Gp, out_pad]      stack of projection biases (zero-padded)
      out_ref : [TB, out_pad]
    """
    x = x_ref[...]  # [TB, sum_in] f32

    # Gate: softmax(x_cat @ Wg + bg). Padded lanes carry a -1e30 bias so
    # exp underflows to 0 and they contribute nothing.
    logits = jnp.dot(x, wg_ref[...], preferred_element_type=jnp.float32) + bg_ref[...]
    m = jnp.max(logits, axis=1, keepdims=True)
    e = jnp.exp(logits - m)
    gate = e * pl.reciprocal(jnp.sum(e, axis=1, keepdims=True), approx=True)  # [TB, Gp]

    # Broadcast each gate value across its input's feature segment (small
    # matmul on the MXU), pre-scale x_cat, then do ONE big projection matmul.
    scale = jnp.dot(gate, seg_ref[...], preferred_element_type=jnp.float32)   # [TB, sum_in]
    fused = jnp.dot(x * scale, ws_ref[...], preferred_element_type=jnp.float32)
    fused = fused + jnp.dot(gate, bs_ref[...], preferred_element_type=jnp.float32)

    out_ref[...] = fused.astype(out_ref.dtype)


def _round_up(x, m):
    return (x + m - 1) // m * m


def gated_weighted_fusion(inputs, proj_weights, proj_biases, gate_weight, gate_bias):
    """inputs[i]: [B, in_dim_i]; proj_weights[i]: [in_dim_i, out_dim] (pre-T);
    proj_biases[i]: [out_dim]; gate_weight: [sum_in, n]; gate_bias: [n].
    Returns [B, out_dim]."""
    num_inputs = len(inputs)
    in_dims = [int(x.shape[1]) for x in inputs]
    sum_in = sum(in_dims)
    B = int(inputs[0].shape[0])
    out_dim = int(proj_weights[0].shape[1])
    dtype = inputs[0].dtype

    out_pad = _round_up(out_dim, 128)   # lane-dense fused-matmul N / output store
    g_pad = _round_up(num_inputs, 128)  # lane-dense gate lanes

    # ---- Parameter packing (glue; in real use cached once per module). ----
    w_stack = jnp.concatenate([w.astype(jnp.float32) for w in proj_weights], axis=0)
    b_stack = jnp.stack([b.astype(jnp.float32) for b in proj_biases], axis=0)
    w_stack = jnp.pad(w_stack, ((0, 0), (0, out_pad - out_dim)))                   # [sum_in, out_pad]
    b_stack = jnp.pad(b_stack, ((0, g_pad - num_inputs), (0, out_pad - out_dim)))  # [Gp, out_pad]

    wg = jnp.pad(gate_weight.astype(jnp.float32), ((0, 0), (0, g_pad - num_inputs)))
    bg = jnp.pad(gate_bias.astype(jnp.float32).reshape(1, -1),
                 ((0, 0), (0, g_pad - num_inputs)), constant_values=-1e30)

    seg = np.zeros((g_pad, sum_in), np.float32)  # seg[i, j] = 1 iff feature j belongs to input i
    off = 0
    for i, d in enumerate(in_dims):
        seg[i, off:off + d] = 1.0
        off += d
    seg = jnp.asarray(seg)

    # ---- Activation glue: single concat; kernel reads activations once. ----
    x_cat = jnp.concatenate([x.astype(jnp.float32) for x in inputs], axis=1)  # [B, sum_in]

    # ---- Batch tile: biggest multiple of 8 that keeps double-buffered tiles
    #      + resident weights inside a v7x-safe VMEM budget. ----
    weight_bytes = 4 * (wg.size + bg.size + seg.size + w_stack.size + b_stack.size)
    budget = 40 * 1024 * 1024
    tb = min(512, _round_up(B, 8))
    while tb > 8 and weight_bytes + 2 * 4 * tb * (sum_in + out_pad) > budget:
        tb -= 8
    b_pad = _round_up(B, tb)
    if b_pad != B:
        x_cat = jnp.pad(x_cat, ((0, b_pad - B), (0, 0)))

    out = pl.pallas_call(
        _fusion_kernel,
        out_shape=jax.ShapeDtypeStruct((b_pad, out_pad), jnp.float32),
        grid=(b_pad // tb,),
        in_specs=[
            pl.BlockSpec((tb, sum_in), lambda i: (i, 0)),       # x_cat: streamed per tile
            pl.BlockSpec((sum_in, g_pad), lambda i: (0, 0)),    # gate W: resident
            pl.BlockSpec((1, g_pad), lambda i: (0, 0)),         # gate b: resident
            pl.BlockSpec((g_pad, sum_in), lambda i: (0, 0)),    # segment indicator: resident
            pl.BlockSpec((sum_in, out_pad), lambda i: (0, 0)),  # stacked proj W: resident
            pl.BlockSpec((g_pad, out_pad), lambda i: (0, 0)),   # stacked proj b: resident
        ],
        out_specs=pl.BlockSpec((tb, out_pad), lambda i: (i, 0)),
        compiler_params=pltpu.CompilerParams(
            dimension_semantics=("parallel",),
            vmem_limit_bytes=48 * 1024 * 1024,
        ),
    )(x_cat, wg, bg, seg, w_stack, b_stack)

    return out[:B, :out_dim].astype(dtype)


def reference_forward(inputs, proj_weights, proj_biases, gate_weight, gate_bias):
    """Pure-JAX reference mirroring the PyTorch module semantics."""
    projected = [x @ w + b for x, w, b in zip(inputs, proj_weights, proj_biases)]
    x_cat = jnp.concatenate(inputs, axis=1)
    gate = jax.nn.softmax(x_cat @ gate_weight + gate_bias, axis=1)
    return sum(gate[:, i:i + 1] * projected[i] for i in range(len(inputs)))


if __name__ == "__main__":
    key = jax.random.PRNGKey(0)

    B = 8
    in_dims = (32, 16)
    out_dim = 32
    num_inputs = len(in_dims)

    keys = jax.random.split(key, 3 * num_inputs + 2)
    k_iter = iter(keys)

    proj_weights, proj_biases = [], []
    for d in in_dims:
        bound = 1.0 / float(np.sqrt(d))
        proj_weights.append(
            jax.random.uniform(next(k_iter), (d, out_dim), jnp.float32, -bound, bound))
        proj_biases.append(
            jax.random.uniform(next(k_iter), (out_dim,), jnp.float32, -bound, bound))
    gbound = 1.0 / float(np.sqrt(sum(in_dims)))
    gate_weight = jax.random.uniform(
        next(k_iter), (sum(in_dims), num_inputs), jnp.float32, -gbound, gbound)
    gate_bias = jax.random.uniform(
        next(k_iter), (num_inputs,), jnp.float32, -gbound, gbound)

    inputs = [jax.random.normal(next(k_iter), (B, d), jnp.float32) for d in in_dims]

    out = gated_weighted_fusion(inputs, proj_weights, proj_biases, gate_weight, gate_bias)
    out = jax.block_until_ready(out)

    ref = reference_forward(inputs, proj_weights, proj_biases, gate_weight, gate_bias)
    assert out.shape == (B, out_dim), out.shape
    # approx=True softmax reciprocal costs ~1e-4 relative accuracy; allow for it.
    err = float(jnp.max(jnp.abs(out - ref)))
    assert jnp.allclose(out, ref, atol=2e-3, rtol=2e-3), f"mismatch vs reference, max err {err}"

    print("KERNEL_OK")
</pallas_src>

<mosaic_0001>
module attributes {stable_mosaic.version = 11 : i64} {
  func.func @_fusion_kernel(%arg0: i32, %arg1: memref<8x48xf32, #tpu.memory_space<vmem>>, %arg2: memref<48x128xf32, #tpu.memory_space<vmem>>, %arg3: memref<1x128xf32, #tpu.memory_space<vmem>>, %arg4: memref<128x48xf32, #tpu.memory_space<vmem>>, %arg5: memref<48x128xf32, #tpu.memory_space<vmem>>, %arg6: memref<128x128xf32, #tpu.memory_space<vmem>>, %arg7: memref<8x128xf32, #tpu.memory_space<vmem>>) attributes {dimension_semantics = [#tpu.dimension_semantics<parallel>], iteration_bounds = array<i64: 1>, scalar_prefetch = 0 : i64, scratch_operands = 0 : i64, tpu.core_type = #tpu.core_type<tc>, window_params = [{transform_indices = @transform_0, window_bounds = array<i64: 8, 48>}, {pipeline_mode = #tpu.pipeline_mode<synchronous>, transform_indices = @transform_1, window_bounds = array<i64: 48, 128>}, {pipeline_mode = #tpu.pipeline_mode<synchronous>, transform_indices = @transform_2, window_bounds = array<i64: 1, 128>}, {pipeline_mode = #tpu.pipeline_mode<synchronous>, transform_indices = @transform_3, window_bounds = array<i64: 128, 48>}, {pipeline_mode = #tpu.pipeline_mode<synchronous>, transform_indices = @transform_4, window_bounds = array<i64: 48, 128>}, {pipeline_mode = #tpu.pipeline_mode<synchronous>, transform_indices = @transform_5, window_bounds = array<i64: 128, 128>}, {transform_indices = @transform_6, window_bounds = array<i64: 8, 128>}]} {
    %c0 = arith.constant 0 : index
    %c0_0 = arith.constant 0 : index
    %0 = vector.load %arg1[%c0, %c0_0] : memref<8x48xf32, #tpu.memory_space<vmem>>, vector<8x48xf32>
    %c0_1 = arith.constant 0 : index
    %c0_2 = arith.constant 0 : index
    %1 = vector.load %arg2[%c0_1, %c0_2] : memref<48x128xf32, #tpu.memory_space<vmem>>, vector<48x128xf32>
    %cst = arith.constant dense<0.000000e+00> : vector<8x128xf32>
    %2 = tpu.matmul %0, %1, %cst {dimension_numbers = #tpu.dot_dimension_numbers<[1], [0], [0], [1], [0, 0, 1, 1], [], []>} : vector<8x48xf32>, vector<48x128xf32>, vector<8x128xf32> -> vector<8x128xf32>
    %c0_3 = arith.constant 0 : index
    %c0_4 = arith.constant 0 : index
    %3 = vector.load %arg3[%c0_3, %c0_4] : memref<1x128xf32, #tpu.memory_space<vmem>>, vector<1x128xf32>
    %4 = vector.broadcast %3 : vector<1x128xf32> to vector<8x128xf32>
    %5 = arith.addf %2, %4 : vector<8x128xf32>
    %cst_5 = arith.constant dense<0xFF800000> : vector<8xf32>
    %6 = vector.multi_reduction <maximumf>, %5, %cst_5 [1] : vector<8x128xf32> to vector<8xf32>
    %7 = vector.shape_cast %6 : vector<8xf32> to vector<8x1xf32>
    %8 = vector.broadcast %7 : vector<8x1xf32> to vector<8x128xf32>
    %9 = arith.subf %5, %8 : vector<8x128xf32>
    %10 = math.exp %9 : vector<8x128xf32>
    %cst_6 = arith.constant dense<0.000000e+00> : vector<8xf32>
    %11 = vector.multi_reduction <add>, %10, %cst_6 [1] : vector<8x128xf32> to vector<8xf32>
    %12 = vector.shape_cast %11 : vector<8xf32> to vector<8x1xf32>
    %13 = tpu.reciprocal %12 {approx = true} : vector<8x1xf32> -> vector<8x1xf32>
    %14 = vector.broadcast %13 : vector<8x1xf32> to vector<8x128xf32>
    %15 = arith.mulf %10, %14 : vector<8x128xf32>
    %c0_7 = arith.constant 0 : index
    %c0_8 = arith.constant 0 : index
    %16 = vector.load %arg4[%c0_7, %c0_8] : memref<128x48xf32, #tpu.memory_space<vmem>>, vector<128x48xf32>
    %cst_9 = arith.constant dense<0.000000e+00> : vector<8x48xf32>
    %17 = tpu.matmul %15, %16, %cst_9 {dimension_numbers = #tpu.dot_dimension_numbers<[1], [0], [0], [1], [0, 0, 1, 1], [], []>} : vector<8x128xf32>, vector<128x48xf32>, vector<8x48xf32> -> vector<8x48xf32>
    %18 = arith.mulf %0, %17 : vector<8x48xf32>
    %c0_10 = arith.constant 0 : index
    %c0_11 = arith.constant 0 : index
    %19 = vector.load %arg5[%c0_10, %c0_11] : memref<48x128xf32, #tpu.memory_space<vmem>>, vector<48x128xf32>
    %cst_12 = arith.constant dense<0.000000e+00> : vector<8x128xf32>
    %20 = tpu.matmul %18, %19, %cst_12 {dimension_numbers = #tpu.dot_dimension_numbers<[1], [0], [0], [1], [0, 0, 1, 1], [], []>} : vector<8x48xf32>, vector<48x128xf32>, vector<8x128xf32> -> vector<8x128xf32>
    %c0_13 = arith.constant 0 : index
    %c0_14 = arith.constant 0 : index
    %21 = vector.load %arg6[%c0_13, %c0_14] : memref<128x128xf32, #tpu.memory_space<vmem>>, vector<128x128xf32>
    %cst_15 = arith.constant dense<0.000000e+00> : vector<8x128xf32>
    %22 = tpu.matmul %15, %21, %cst_15 {dimension_numbers = #tpu.dot_dimension_numbers<[1], [0], [0], [1], [0, 0, 1, 1], [], []>} : vector<8x128xf32>, vector<128x128xf32>, vector<8x128xf32> -> vector<8x128xf32>
    %23 = arith.addf %20, %22 : vector<8x128xf32>
    %c0_16 = arith.constant 0 : index
    %c0_17 = arith.constant 0 : index
    %24 = vector.load %arg7[%c0_16, %c0_17] : memref<8x128xf32, #tpu.memory_space<vmem>>, vector<8x128xf32>
    tpu.vector_store %arg7[%c0_16, %c0_17], %23 {strides = array<i32>} : memref<8x128xf32, #tpu.memory_space<vmem>>, vector<8x128xf32>,
    return
  }
  func.func @transform_0(%arg0: i32) -> (i32, i32) {
    %c0_i32 = arith.constant 0 : i32
    %c0_i32_0 = arith.constant 0 : i32
    return %arg0, %c0_i32 : i32, i32
  }
  func.func @transform_1(%arg0: i32) -> (i32, i32) {
    %c0_i32 = arith.constant 0 : i32
    %c0_i32_0 = arith.constant 0 : i32
    %c0_i32_1 = arith.constant 0 : i32
    return %c0_i32, %c0_i32_0 : i32, i32
  }
  func.func @transform_2(%arg0: i32) -> (i32, i32) {
    %c0_i32 = arith.constant 0 : i32
    %c0_i32_0 = arith.constant 0 : i32
    %c0_i32_1 = arith.constant 0 : i32
    return %c0_i32, %c0_i32_0 : i32, i32
  }
  func.func @transform_3(%arg0: i32) -> (i32, i32) {
    %c0_i32 = arith.constant 0 : i32
    %c0_i32_0 = arith.constant 0 : i32
    %c0_i32_1 = arith.constant 0 : i32
    return %c0_i32, %c0_i32_0 : i32, i32
  }
  func.func @transform_4(%arg0: i32) -> (i32, i32) {
    %c0_i32 = arith.constant 0 : i32
    %c0_i32_0 = arith.constant 0 : i32
    %c0_i32_1 = arith.constant 0 : i32
    return %c0_i32, %c0_i32_0 : i32, i32
  }
  func.func @transform_5(%arg0: i32) -> (i32, i32) {
    %c0_i32 = arith.constant 0 : i32
    %c0_i32_0 = arith.constant 0 : i32
    %c0_i32_1 = arith.constant 0 : i32
    return %c0_i32, %c0_i32_0 : i32, i32
  }
  func.func @transform_6(%arg0: i32) -> (i32, i32) {
    %c0_i32 = arith.constant 0 : i32
    %c0_i32_0 = arith.constant 0 : i32
    return %arg0, %c0_i32 : i32, i32
  }
}

</mosaic_0001>

<bundles_post_ra>
// kernel: tpu_custom_call.1
= control target key start
LH: loop header
LB: loop body
LE: loop exit
PB: predicated region body
PF: predicated region fallthrough
CT: control target
= control target key end

     0   :  { %11 = vsyncpa [#allocation3], 0  ;;  %s833_s0 = inlined_call_operand.vmem [shape: f32[8,48], index: 0, kind: input, shape index: {}]   ;;  %s834_s1 = inlined_call_operand.vmem [shape: f32[48,128], index: 1, kind: input, shape index: {}]   ;;  %s835_s2 = inlined_call_operand.vmem [shape: f32[1,128], index: 2, kind: input, shape index: {}]   ;;  %s836_s3 = inlined_call_operand.vmem [shape: f32[128,48], index: 3, kind: input, shape index: {}]   ;;  %s837_s4 = inlined_call_operand.hbm [shape: f32[48,128], index: 4, kind: input, shape index: {}]   ;;  %s838_s5 = inlined_call_operand.vmem [shape: f32[128,128], index: 5, kind: input, shape index: {}]   ;;  %s839_s6 = inlined_call_operand.hbm [shape: f32[8,128], index: 6, kind: output, shape index: {}]  }
   0x1   :  { %12 = vsyncpa [#allocation4], 0  ;;  %s608_s21 = smov [#allocation2]  }
   0x2   :  { %s26_s22 = sshll.u32 %s608_s21, 4  ;;  %s27_s22 = int_to_ptr.vmem [resolvable:$true] %s26_s22 }
   0x3   :  { %s572_s23 = scalar_lea.vmem %s27_s22, 768  ;;  %p577_p1 = scmp.lt.s32.totalorder %s27_s22, %s27_s22 }
   0x4   :  { %p573_p0 = scmp.ne.s32.totalorder %s27_s22, %s572_s23  ;;  %p578_p2 = scmp.lt.s32.totalorder %s572_s23, %s572_s23 }
   0x6   :  { %p579_p3 = por %p578_p2, %p577_p1 }
   0x8   :  { %p580_p4 = pnand %p579_p3, %p573_p0 }
   0xa   :  { %583 = shalt.err (!%p580_p4)
}
   0xb   :  { %s609_s24 = smov 128   ;;  %s610_s25 = smov 8  }
   0xc   :  { %32 = dma.hbm_to_vmem [thread:$0]  %s837_s4, 768, %s27_s22, [#allocation3], %s609_s24, %s609_s24, %s610_s25  }
   0xd   :  { %604 = dma.done.wait [#allocation3], 768  }
   0xe   :  { %605 = vsyncadd [#allocation3], 4294966528  ;;  %v611_v0 = vmov 0.0   ;;  %vm612_vm0 = vmmov 0   ;;  %v44_v1 = vld [vmem:[%s834_s1 + $0x28] sm:$0xff]  ;;  %v43_v2 = vld [vmem:[%s834_s1 + $0x20] sm:$0xff] }
   0xf   :  { %454 = vmatprep.subr.mxu0 %v611_v0  ;;  %466 = vmatprep.mubr.msk.f32.mxu0 %vm612_vm0, %v611_v0  ;;  %v42_v3 = vld [vmem:[%s834_s1 + $0x18] sm:$0xff]  ;;  %v41_v4 = vld [vmem:[%s834_s1 + $0x10] sm:$0xff]  ;;  %v40_v5 = vld [vmem:[%s834_s1 + $0x8] sm:$0xff]  ;;  %vm52_vm1 = vcmask 392192  }
  0x10   :  { %469 = vmatprep.subr.mxu1 %v611_v0  ;;  %501 = vmatprep.mubr.msk.f32.mxu1 %vm612_vm0, %v611_v0  ;;  %v39_v6 = vld [vmem:[%s834_s1] sm:$0xff]  ;;  %v150_v12 = vld [vmem:[%s836_s3 + $0x78] sm:$0xff]  ;;  %v149_v14 = vld [vmem:[%s836_s3 + $0x70] sm:$0xff] }
  0x11   :  { %455 = vmatpush3.msra.mxu0 %v44_v1  ;;  %v683_v7 = vld [vmem:[%s833_s0] sm:$0xff]  ;;  %v243_v13 = vld [vmem:[%s838_s5 + $0x78] sm:$0xff]  ;;  %470 = vmatpush3.msra.mxu1 %v150_v12  ;;  %v242_v15 = vld [vmem:[%s838_s5 + $0x70] sm:$0xff] }
  0x12   :  { %456 = vmatprep.subr.mxu0 %v611_v0  ;;  %v403_v8 = vld [vmem:[%s835_s2] ss:$0 sm:$0xff]  ;;  %471 = vmatprep.subr.mxu1 %v611_v0  ;;  %v148_v16 = vld [vmem:[%s836_s3 + $0x68] sm:$0xff]  ;;  %v146_v20 = vld [vmem:[%s836_s3 + $0x58] sm:$0xff] }
  0x13   :  { %457 = vmatpush3.msra.mxu0 %v43_v2  ;;  %v241_v17 = vld [vmem:[%s838_s5 + $0x68] sm:$0xff]  ;;  %472 = vmatpush3.msra.mxu1 %v149_v14  ;;  %v147_v18 = vld [vmem:[%s836_s3 + $0x60] sm:$0xff]  ;;  %v239_v21 = vld [vmem:[%s838_s5 + $0x58] sm:$0xff] }
  0x14   :  { %458 = vmatprep.subr.mxu0 %v611_v0  ;;  %473 = vmatprep.subr.mxu1 %v611_v0  ;;  %v240_v19 = vld [vmem:[%s838_s5 + $0x60] sm:$0xff]  ;;  %v145_v22 = vld [vmem:[%s836_s3 + $0x50] sm:$0xff]  ;;  %v144_v24 = vld [vmem:[%s836_s3 + $0x48] sm:$0xff] }
  0x15   :  { %459 = vmatpush3.msra.mxu0 %v42_v3  ;;  %474 = vmatpush3.msra.mxu1 %v148_v16  ;;  %v238_v23 = vld [vmem:[%s838_s5 + $0x50] sm:$0xff]  ;;  %v237_v25 = vld [vmem:[%s838_s5 + $0x48] sm:$0xff]  ;;  %v143_v26 = vld [vmem:[%s836_s3 + $0x40] sm:$0xff] }
  0x16   :  { %460 = vmatprep.subr.mxu0 %v611_v0  ;;  %475 = vmatprep.subr.mxu1 %v611_v0  ;;  %v236_v27 = vld [vmem:[%s838_s5 + $0x40] sm:$0xff]  ;;  %v142_v32 = vld [vmem:[%s836_s3 + $0x38] sm:$0xff]  ;;  %v141_v34 = vld [vmem:[%s836_s3 + $0x30] sm:$0xff] }
  0x17   :  { %461 = vmatpush3.msra.mxu0 %v41_v4  ;;  %476 = vmatpush3.msra.mxu1 %v147_v18  ;;  %v235_v33 = vld [vmem:[%s838_s5 + $0x38] sm:$0xff]  ;;  %v234_v35 = vld [vmem:[%s838_s5 + $0x30] sm:$0xff]  ;;  %v140_v36 = vld [vmem:[%s836_s3 + $0x28] sm:$0xff] }
  0x18   :  { %462 = vmatprep.subr.mxu0 %v611_v0  ;;  %477 = vmatprep.subr.mxu1 %v611_v0  ;;  %v233_v37 = vld [vmem:[%s838_s5 + $0x28] sm:$0xff]  ;;  %v139_v38 = vld [vmem:[%s836_s3 + $0x20] sm:$0xff]  ;;  %v138_v40 = vld [vmem:[%s836_s3 + $0x18] sm:$0xff] }
  0x19   :  { %463 = vmatpush3.msra.mxu0 %v40_v5  ;;  %478 = vmatpush3.msra.mxu1 %v146_v20  ;;  %v232_v39 = vld [vmem:[%s838_s5 + $0x20] sm:$0xff]  ;;  %v231_v41 = vld [vmem:[%s838_s5 + $0x18] sm:$0xff]  ;;  %v137_v42 = vld [vmem:[%s836_s3 + $0x10] sm:$0xff] }
  0x1a   :  { %464 = vmatprep.subr.mxu0 %v611_v0  ;;  %479 = vmatprep.subr.mxu1 %v611_v0  ;;  %v230_v43 = vld [vmem:[%s838_s5 + $0x10] sm:$0xff]  ;;  %v136_v44 = vld [vmem:[%s836_s3 + $0x8] sm:$0xff]  ;;  %v135_v46 = vld [vmem:[%s836_s3] sm:$0xff]  ;;  %s613_s3 = smov [#allocation5]  }
  0x1b   :  { %465 = vmatpush3.msra.mxu0 %v39_v6  ;;  %480 = vmatpush3.msra.mxu1 %v145_v22  ;;  %v229_v45 = vld [vmem:[%s838_s5 + $0x8] sm:$0xff]  ;;  %v228_v47 = vld [vmem:[%s838_s5] sm:$0xff]  ;;  %v225_v53 = vld [vmem:[#allocation2 + $0x18] sm:$0xff]  ;;  %s394_s5 = sshll.u32 %s613_s3, 4  ;;  %s395_s5 = int_to_ptr.vmem [resolvable:$true] %s394_s5 }
  0x1c   :  { %467 = vmatmul.mubr.msk.f32.vlgmr.msra.gmra.mxu0 %vm52_vm1, %v683_v7  ;;  %504 = vmatprep.subr.mxu0 %v611_v0  ;;  %v227_v51 = vld [vmem:[#allocation2 + $0x28] sm:$0xff]  ;;  %v226_v52 = vld [vmem:[#allocation2 + $0x20] sm:$0xff]  ;;  %v224_v54 = vld [vmem:[#allocation2 + $0x10] sm:$0xff]  ;;  %s584_s24 = scalar_lea.vmem %s395_s5, 128  ;;  %p589_p6 = scmp.lt.s32.totalorder %s395_s5, %s395_s5 }
  0x1d   :  { %536 = vmatprep.mubr.msk.f32.mxu0 %vm612_vm0, %v611_v0  ;;  %505 = vmatpush3.msra.mxu0 %v243_v13  ;;  %v223_v55 = vld [vmem:[#allocation2 + $0x8] sm:$0xff]  ;;  %v222_v56 = vld [vmem:[#allocation2] sm:$0xff]  ;;  %p585_p5 = scmp.ne.s32.totalorder %s395_s5, %s584_s24  ;;  %p590_p7 = scmp.lt.s32.totalorder %s584_s24, %s584_s24 }
  0x1e   :  { %506 = vmatprep.subr.mxu0 %v611_v0  ;;  %481 = vmatprep.subr.mxu1 %v611_v0 }
  0x1f   :  { %507 = vmatpush3.msra.mxu0 %v242_v15  ;;  %482 = vmatpush3.msra.mxu1 %v144_v24  ;;  %p591_p8 = por %p590_p7, %p589_p6 }
  0x20   :  { %508 = vmatprep.subr.mxu0 %v611_v0  ;;  %483 = vmatprep.subr.mxu1 %v611_v0 }
  0x21   :  { %509 = vmatpush3.msra.mxu0 %v241_v17  ;;  %484 = vmatpush3.msra.mxu1 %v143_v26  ;;  %p592_p9 = pnand %p591_p8, %p585_p5 }
  0x22   :  { %510 = vmatprep.subr.mxu0 %v611_v0  ;;  %485 = vmatprep.subr.mxu1 %v611_v0 }
  0x23   :  { %511 = vmatpush3.msra.mxu0 %v240_v19  ;;  %486 = vmatpush3.msra.mxu1 %v142_v32 }
  0x24   :  { %512 = vmatprep.subr.mxu0 %v611_v0  ;;  %487 = vmatprep.subr.mxu1 %v611_v0 }
  0x25   :  { %513 = vmatpush3.msra.mxu0 %v239_v21  ;;  %488 = vmatpush3.msra.mxu1 %v141_v34 }
  0x26   :  { %514 = vmatprep.subr.mxu0 %v611_v0  ;;  %489 = vmatprep.subr.mxu1 %v611_v0 }
  0x27   :  { %515 = vmatpush3.msra.mxu0 %v238_v23  ;;  %490 = vmatpush3.msra.mxu1 %v140_v36 }
  0x28   :  { %516 = vmatprep.subr.mxu0 %v611_v0  ;;  %491 = vmatprep.subr.mxu1 %v611_v0 }
  0x29   :  { %517 = vmatpush3.msra.mxu0 %v237_v25  ;;  %492 = vmatpush3.msra.mxu1 %v139_v38 }
  0x2a   :  { %518 = vmatprep.subr.mxu0 %v611_v0  ;;  %493 = vmatprep.subr.mxu1 %v611_v0 }
  0x2b   :  { %519 = vmatpush3.msra.mxu0 %v236_v27  ;;  %494 = vmatpush3.msra.mxu1 %v138_v40 }
  0x2c   :  { %520 = vmatprep.subr.mxu0 %v611_v0  ;;  %495 = vmatprep.subr.mxu1 %v611_v0 }
  0x2d   :  { %521 = vmatpush3.msra.mxu0 %v235_v33  ;;  %496 = vmatpush3.msra.mxu1 %v137_v42 }
  0x2e   :  { %522 = vmatprep.subr.mxu0 %v611_v0  ;;  %497 = vmatprep.subr.mxu1 %v611_v0 }
  0x2f   :  { %523 = vmatpush3.msra.mxu0 %v234_v35  ;;  %498 = vmatpush3.msra.mxu1 %v136_v44 }
  0x30   :  { %524 = vmatprep.subr.mxu0 %v611_v0  ;;  %499 = vmatprep.subr.mxu1 %v611_v0 }
  0x31   :  { %525 = vmatpush3.msra.mxu0 %v233_v37  ;;  %500 = vmatpush3.msra.mxu1 %v135_v46 }
  0x32   :  { %526 = vmatprep.subr.mxu0 %v611_v0  ;;  %539 = vmatprep.subr.mxu1 %v611_v0 }
  0x33   :  { %527 = vmatpush3.msra.mxu0 %v232_v39 }
  0x34   :  { %528 = vmatprep.subr.mxu0 %v611_v0 }
  0x35   :  { %529 = vmatpush3.msra.mxu0 %v231_v41 }
  0x36   :  { %530 = vmatprep.subr.mxu0 %v611_v0 }
  0x37   :  { %531 = vmatpush3.msra.mxu0 %v230_v43 }
  0x38   :  { %532 = vmatprep.subr.mxu0 %v611_v0 }
  0x39   :  { %533 = vmatpush3.msra.mxu0 %v229_v45 }
  0x3a   :  { %534 = vmatprep.subr.mxu0 %v611_v0 }
  0x3b   :  { %535 = vmatpush3.msra.mxu0 %v228_v47 }
  0xdc   :  { %v122_v9 = vpop.f32.mrf.mxu0 }
  0xdd   :  { %v123_v10 = vadd.f32 %v403_v8, %v122_v9 }
  0xde   :  { %v468_v11 = vpop.f32.mrf.mxu0 }
  0xdf   :  { %126 = vmax.xlane.f32.xlu0 %v123_v10 }
 0x168   :  { %v127_v28 = vpop.xlane.xlu0 %126 }
 0x169   :  { %v128_v29 = vsub.f32 %v123_v10, %v127_v28 }
 0x16b   :  { %v129_v30 = vmul.f32 1.442695, %v128_v29 }
 0x16d   :  { %560 = vpow2.f32 %v129_v30 }
 0x17a   :  { %v561_v31 = vpop.eup %560 }
 0x17b   :  { %131 = vadd.xlane.f32.xlu0 %v561_v31 }
 0x204   :  { %v132_v48 = vpop.xlane.xlu0 %131 }
 0x205   :  { %562 = vrcp.f32 %v132_v48 }
 0x212   :  { %v563_v49 = vpop.eup %562 }
 0x213   :  { %v134_v50 = vmul.f32 %v563_v49, %v561_v31 }
 0x215   :  { %502 = vmatmul.mubr.f32.vlgmr.msra.gmra.mxu1 %v134_v50  ;;  %537 = vmatmul.mubr.f32.vlgmr.msra.gmra.mxu0 %v134_v50 }
 0x216   :  { %540 = vmatpush3.msra.mxu1 %v227_v51  ;;  %551 = vmatprep.mubr.msk.f32.mxu1 %vm612_vm0, %v611_v0 }
 0x217   :  { %541 = vmatprep.subr.mxu1 %v611_v0 }
 0x218   :  { %542 = vmatpush3.msra.mxu1 %v226_v52 }
 0x219   :  { %543 = vmatprep.subr.mxu1 %v611_v0 }
 0x21a   :  { %544 = vmatpush3.msra.mxu1 %v225_v53 }
 0x21b   :  { %545 = vmatprep.subr.mxu1 %v611_v0 }
 0x21c   :  { %546 = vmatpush3.msra.mxu1 %v224_v54 }
 0x21d   :  { %547 = vmatprep.subr.mxu1 %v611_v0 }
 0x21e   :  { %548 = vmatpush3.msra.mxu1 %v223_v55 }
 0x21f   :  { %549 = vmatprep.subr.mxu1 %v611_v0 }
 0x220   :  { %550 = vmatpush3.msra.mxu1 %v222_v56 }
 0x2d5   :  { %v217_v57 = vpop.f32.mrf.mxu1  ;;  %v310_v58 = vpop.f32.mrf.mxu0 }
 0x2d6   :  { %v221_v59 = vmul.f32 %v217_v57, %v683_v7 }
 0x2d7   :  { %v503_v60 = vpop.f32.mrf.mxu1  ;;  %v538_v61 = vpop.f32.mrf.mxu0 }
 0x2d8   :  { %552 = vmatmul.mubr.msk.f32.vlgmr.msra.gmra.mxu1 %vm52_vm1, %v221_v59 }
 0x398   :  { %v383_v62 = vpop.f32.mrf.mxu1 }
 0x399   :  { %v384_v63 = vadd.f32 %v383_v62, %v310_v58 }
 0x39a   :  { %v553_v1 = vpop.f32.mrf.mxu1 }
 0x39b   :  { %387 = vst [vmem:[#allocation5] sm:$0xff] %v384_v63 }
 0x39c   :  { %595 = shalt.err (!%p592_p9)
}
 0x39d   :  { %397 = dma.vmem_to_hbm [thread:$0]  %s395_s5, 128, %s839_s6, [#allocation4]  }
 0x39e   :  { %606 = dma.done.wait [#allocation4], 128  }
 0x39f   :  { %607 = vsyncadd [#allocation4], 4294967168 }
 0x3a0   :  { %401 = vsyncpa [#allocation3], 1 }
 0x3a1   :  { %402 = vsyncpa [#allocation4], 1 }

</bundles_post_ra>
